<compile_context>
chip_gen: v5e
topology: v5e:2x2
jax: 0.10.0
libtpu: 0.0.40
codegen_flags: <defaults>
</compile_context>

<pallas_src>
import functools

import jax
import jax.numpy as jnp
from jax.experimental import pallas as pl
from jax.experimental.pallas import tpu as pltpu


def _first_shot_kernel(doc_ref, qt_ref, probs_ref, *, n_classes: int,
                       n_docs: int, tile_n: int, normalize: bool,
                       inv_temp: float, mask_tail: bool):
    """One document tile: normalize rows, matmul with resident queries, softmax."""
    d32 = doc_ref[...].astype(jnp.float32)               # [tile_n, D] in f32

    if mask_tail:
        # Last grid block is ragged: rows >= valid hold undefined VMEM data.
        valid = n_docs - pl.program_id(0) * tile_n
        row = jax.lax.broadcasted_iota(jnp.int32, d32.shape, 0)
        d32 = jnp.where(row < valid, d32, 0.0)

    if normalize:
        # torch.nn.functional.normalize: x / max(||x||, 1e-12); rsqrt -> EUP.
        sumsq = jnp.sum(d32 * d32, axis=-1, keepdims=True)
        d32 = d32 * jax.lax.rsqrt(jnp.maximum(sumsq, 1e-24))

    # bf16 MXU operands, f32 accumulation.
    logits = jnp.dot(d32.astype(jnp.bfloat16), qt_ref[...],
                     preferred_element_type=jnp.float32)  # [tile_n, c_pad] f32
    logits = logits * inv_temp                            # temperature in f32

    # Numerically-stable softmax over the real class columns.  One select
    # covers both max and sum: padded columns -> -inf -> exp(-inf) = 0.
    col = jax.lax.broadcasted_iota(jnp.int32, logits.shape, 1)
    masked = jnp.where(col < n_classes, logits, -jnp.inf)
    m = jnp.max(masked, axis=-1, keepdims=True)
    e = jnp.exp(masked - m)
    denom = jnp.sum(e, axis=-1, keepdims=True)
    probs = e / denom                                     # exact: rows sum to 1
    # Narrow masked store to HBM (only the real class columns).
    probs_ref[...] = probs[:, :n_classes].astype(probs_ref.dtype)


def first_shot_forward(doc_emb: jax.Array,
                       query_emb: jax.Array,
                       temperature: float = 1.0,
                       normalize_embeddings: bool = True) -> jax.Array:
    """Pallas FirstShotModel.forward on precomputed embeddings.

    doc_emb:   [N, D] document embeddings (f32 or bf16)
    query_emb: [C, D] class-hypothesis embeddings
    returns:   [N, C] softmax class probabilities (f32)
    """
    N, D = doc_emb.shape
    C, D2 = query_emb.shape
    assert D == D2

    # ---- Query-side preprocessing (init-time work in the torch module). ----
    q = query_emb.astype(jnp.float32)
    if normalize_embeddings:
        q = q * jax.lax.rsqrt(
            jnp.maximum(jnp.sum(q * q, axis=-1, keepdims=True), 1e-24))
    c_pad = 128 * pl.cdiv(C, 128)                          # lane-dense logits tile
    q = jnp.pad(q, ((0, c_pad - C), (0, 0)))
    qt = jnp.transpose(q).astype(jnp.bfloat16)             # [D, c_pad] bf16 MXU operand

    # ---- Per-generation VMEM budget. ----
    # v5e/v6e: 128 MiB physical -> 64 MiB limit; v7x: 64 MiB -> 32 MiB limit.
    try:
        vmem_cap = int(pltpu.get_tpu_info().vmem_capacity_bytes)
    except Exception:
        vmem_cap = 64 * 1024 * 1024                        # v7x-safe fallback
    vmem_limit = min(max(vmem_cap // 2, 32 * 1024 * 1024), 96 * 1024 * 1024)

    # ---- Doc tile sized from D, dtype and VMEM (not a fixed 512). ----
    itemsize = jnp.dtype(doc_emb.dtype).itemsize
    target_bytes = min(vmem_limit // 4, 16 * 1024 * 1024)  # per doc block
    tile_n = int(target_bytes // (D * itemsize))
    tile_n = max(8, min(tile_n, 4096))
    if N >= 8:
        tile_n = min(tile_n, (N // 8) * 8)                 # multiple of 8, <= N
    else:
        tile_n = N                                         # full-dim block
    grid = (pl.cdiv(N, tile_n),)
    mask_tail = (N % tile_n) != 0

    cost = pl.CostEstimate(
        flops=2 * N * c_pad * D,
        transcendentals=N * (c_pad + 1),
        bytes_accessed=(N * D * itemsize
                        + qt.size * qt.dtype.itemsize
                        + N * C * 4))

    kernel = functools.partial(
        _first_shot_kernel, n_classes=C, n_docs=N, tile_n=tile_n,
        normalize=bool(normalize_embeddings),
        inv_temp=1.0 / float(temperature), mask_tail=mask_tail)

    return pl.pallas_call(
        kernel,
        out_shape=jax.ShapeDtypeStruct((N, C), jnp.float32),
        grid=grid,
        in_specs=[
            pl.BlockSpec((tile_n, D), lambda i: (i, 0)),   # doc tiles, pipelined
            pl.BlockSpec((D, c_pad), lambda i: (0, 0)),    # queries, VMEM-resident
        ],
        out_specs=pl.BlockSpec((tile_n, C), lambda i: (i, 0)),  # narrow HBM write
        compiler_params=pltpu.CompilerParams(
            dimension_semantics=("parallel",),             # megacore on v7x
            vmem_limit_bytes=vmem_limit,
        ),
        cost_estimate=cost,
    )(doc_emb, qt)


def _reference(doc_emb, query_emb, temperature=1.0, normalize=True):
    doc = doc_emb.astype(jnp.float32)
    qry = query_emb.astype(jnp.float32)
    if normalize:
        doc = doc / jnp.maximum(
            jnp.linalg.norm(doc, axis=-1, keepdims=True), 1e-12)
        qry = qry / jnp.maximum(
            jnp.linalg.norm(qry, axis=-1, keepdims=True), 1e-12)
    logits = doc @ qry.T
    return jax.nn.softmax(logits / temperature, axis=1)


if __name__ == "__main__":
    key = jax.random.PRNGKey(0)
    k_doc, k_qry, k_doc2 = jax.random.split(key, 3)

    D, C = 32, 4
    temperature = 0.7
    query_emb = jax.random.normal(k_qry, (C, D), dtype=jnp.float32)

    # Case 1: sublane-divisible batch (batch of 8 docs, hidden=32, 4 classes).
    N1 = 8
    doc1 = jax.random.normal(k_doc, (N1, D), dtype=jnp.float32)
    z1 = first_shot_forward(doc1, query_emb, temperature=temperature,
                            normalize_embeddings=True)
    jax.block_until_ready(z1)
    ref1 = _reference(doc1, query_emb, temperature=temperature, normalize=True)
    assert z1.shape == (N1, C)
    assert jnp.allclose(jnp.sum(z1, axis=1), 1.0, atol=1e-5)
    # Tolerance accounts for bf16 MXU operands (f32 accumulation).
    assert jnp.allclose(z1, ref1, atol=2e-2, rtol=2e-2)

    # Case 2: ragged batch — exercises the no-pad ragged-last-block path.
    N2 = 13
    doc2 = jax.random.normal(k_doc2, (N2, D), dtype=jnp.float32)
    z2 = first_shot_forward(doc2, query_emb, temperature=temperature,
                            normalize_embeddings=True)
    jax.block_until_ready(z2)
    ref2 = _reference(doc2, query_emb, temperature=temperature, normalize=True)
    assert z2.shape == (N2, C)
    assert jnp.allclose(jnp.sum(z2, axis=1), 1.0, atol=1e-5)
    assert jnp.allclose(z2, ref2, atol=2e-2, rtol=2e-2)

    print("KERNEL_OK")
</pallas_src>

<mosaic_0001>
module attributes {stable_mosaic.version = 11 : i64} {
  func.func @_first_shot_kernel(%arg0: i32, %arg1: memref<8x32xf32, #tpu.memory_space<vmem>>, %arg2: memref<32x128xbf16, #tpu.memory_space<vmem>>, %arg3: memref<8x4xf32, #tpu.memory_space<vmem>>) attributes {dimension_semantics = [#tpu.dimension_semantics<parallel>], iteration_bounds = array<i64: 1>, scalar_prefetch = 0 : i64, scratch_operands = 0 : i64, tpu.core_type = #tpu.core_type<tc>, window_params = [{transform_indices = @transform_0, window_bounds = array<i64: 8, 32>}, {pipeline_mode = #tpu.pipeline_mode<synchronous>, transform_indices = @transform_1, window_bounds = array<i64: 32, 128>}, {transform_indices = @transform_2, window_bounds = array<i64: 8, 4>}]} {
    %c0 = arith.constant 0 : index
    %c0_0 = arith.constant 0 : index
    %0 = vector.load %arg1[%c0, %c0_0] : memref<8x32xf32, #tpu.memory_space<vmem>>, vector<8x32xf32>
    %1 = arith.mulf %0, %0 : vector<8x32xf32>
    %cst = arith.constant dense<0.000000e+00> : vector<8xf32>
    %2 = vector.multi_reduction <add>, %1, %cst [1] : vector<8x32xf32> to vector<8xf32>
    %3 = vector.shape_cast %2 : vector<8xf32> to vector<8x1xf32>
    %cst_1 = arith.constant 1.000000e-24 : f32
    %4 = vector.broadcast %cst_1 : f32 to vector<8x1xf32>
    %5 = arith.maximumf %3, %4 : vector<8x1xf32>
    %6 = math.rsqrt %5 : vector<8x1xf32>
    %7 = vector.broadcast %6 : vector<8x1xf32> to vector<8x32xf32>
    %8 = arith.mulf %0, %7 : vector<8x32xf32>
    %9 = arith.truncf %8 : vector<8x32xf32> to vector<8x32xbf16>
    %c0_2 = arith.constant 0 : index
    %c0_3 = arith.constant 0 : index
    %10 = vector.load %arg2[%c0_2, %c0_3] : memref<32x128xbf16, #tpu.memory_space<vmem>>, vector<32x128xbf16>
    %cst_4 = arith.constant dense<0.000000e+00> : vector<8x128xf32>
    %11 = tpu.matmul %9, %10, %cst_4 {dimension_numbers = #tpu.dot_dimension_numbers<[1], [0], [0], [1], [0, 0, 1, 1], [], []>} : vector<8x32xbf16>, vector<32x128xbf16>, vector<8x128xf32> -> vector<8x128xf32>
    %cst_5 = arith.constant 1.42857146 : f32
    %12 = vector.broadcast %cst_5 : f32 to vector<8x128xf32>
    %13 = arith.mulf %11, %12 : vector<8x128xf32>
    %14 = tpu.iota {dimensions = array<i32: 1>} : vector<8x128xi32>
    %c4_i32 = arith.constant 4 : i32
    %15 = vector.broadcast %c4_i32 : i32 to vector<8x128xi32>
    %16 = arith.cmpi slt, %14, %15 : vector<8x128xi32>
    %cst_6 = arith.constant 0xFF800000 : f32
    %17 = vector.broadcast %cst_6 : f32 to vector<8x128xf32>
    %18 = arith.select %16, %13, %17 : vector<8x128xi1>, vector<8x128xf32>
    %cst_7 = arith.constant dense<0xFF800000> : vector<8xf32>
    %19 = vector.multi_reduction <maximumf>, %18, %cst_7 [1] : vector<8x128xf32> to vector<8xf32>
    %20 = vector.shape_cast %19 : vector<8xf32> to vector<8x1xf32>
    %21 = vector.broadcast %20 : vector<8x1xf32> to vector<8x128xf32>
    %22 = arith.subf %18, %21 : vector<8x128xf32>
    %23 = math.exp %22 : vector<8x128xf32>
    %cst_8 = arith.constant dense<0.000000e+00> : vector<8xf32>
    %24 = vector.multi_reduction <add>, %23, %cst_8 [1] : vector<8x128xf32> to vector<8xf32>
    %25 = vector.shape_cast %24 : vector<8xf32> to vector<8x1xf32>
    %26 = vector.broadcast %25 : vector<8x1xf32> to vector<8x128xf32>
    %27 = arith.divf %23, %26 : vector<8x128xf32>
    %28 = vector.extract_strided_slice %27 {offsets = [0, 0], sizes = [8, 4], strides = [1, 1]} : vector<8x128xf32> to vector<8x4xf32>
    %c0_9 = arith.constant 0 : index
    %c0_10 = arith.constant 0 : index
    %29 = vector.load %arg3[%c0_9, %c0_10] : memref<8x4xf32, #tpu.memory_space<vmem>>, vector<8x4xf32>
    tpu.vector_store %arg3[%c0_9, %c0_10], %28 {strides = array<i32>} : memref<8x4xf32, #tpu.memory_space<vmem>>, vector<8x4xf32>,
    return
  }
  func.func @transform_0(%arg0: i32) -> (i32, i32) {
    %c0_i32 = arith.constant 0 : i32
    %c0_i32_0 = arith.constant 0 : i32
    return %arg0, %c0_i32 : i32, i32
  }
  func.func @transform_1(%arg0: i32) -> (i32, i32) {
    %c0_i32 = arith.constant 0 : i32
    %c0_i32_0 = arith.constant 0 : i32
    %c0_i32_1 = arith.constant 0 : i32
    return %c0_i32, %c0_i32_0 : i32, i32
  }
  func.func @transform_2(%arg0: i32) -> (i32, i32) {
    %c0_i32 = arith.constant 0 : i32
    %c0_i32_0 = arith.constant 0 : i32
    return %arg0, %c0_i32 : i32, i32
  }
}

</mosaic_0001>

<bundles_post_ra>
// kernel: tpu_custom_call.1
= control target key start
LH: loop header
LB: loop body
LE: loop exit
PB: predicated region body
PF: predicated region fallthrough
CT: control target
= control target key end

     0   :  { %7 = vsyncpa [#allocation3], 0  ;;  %s231_s0 = inlined_call_operand.hbm [shape: f32[8,32], index: 0, kind: input, shape index: {}]   ;;  %s232_s1 = inlined_call_operand.hbm [shape: bf16[32,128], index: 1, kind: input, shape index: {}]   ;;  %s233_s2 = inlined_call_operand.vmem [shape: f32[8,4], index: 2, kind: output, shape index: {}]  }
   0x1   :  { %s14_s11 = sshll.u32 %s231_s0, 4  ;;  %s15_s11 = int_to_ptr.hbm [resolvable:$true] %s14_s11 }
   0x2   :  { %8 = vsyncpa [#allocation5], 0  ;;  %s201_s12 = smov [#allocation2]   ;;  %s24_s16 = sshll.u32 %s232_s1, 4  ;;  %s25_s16 = int_to_ptr.hbm [resolvable:$true] %s24_s16 }
   0x3   :  { %s16_s13 = sshll.u32 %s201_s12, 4  ;;  %s202_s17 = smov [#allocation4]   ;;  %s17_s13 = int_to_ptr.vmem [resolvable:$true] %s16_s13 }
   0x4   :  { %19 = dma.hbm_to_vmem [thread:$0]  %s15_s11, 128, %s17_s13, [#allocation3]  }
   0x5   :  { %s26_s18 = sshll.u32 %s202_s17, 4  ;;  %s203_s19 = smov 64   ;;  %s27_s18 = int_to_ptr.vmem [resolvable:$true] %s26_s18 }
   0x6   :  { %s204_s20 = smov 4  }
   0x7   :  { %32 = dma.hbm_to_vmem [thread:$0]  %s25_s16, 256, %s27_s18, [#allocation5], %s203_s19, %s203_s19, %s204_s20  }
   0x8   :  { %197 = dma.done.wait [#allocation3], 128  }
   0x9   :  { %198 = vsyncadd [#allocation3], 4294967168 }
   0xa   :  { %199 = dma.done.wait [#allocation5], 256  }
   0xb   :  { %200 = vsyncadd [#allocation5], 4294967040  ;;  %v42_v0 = vld [vmem:[#allocation2] sm:$0xff]  ;;  %vm44_vm0 = vcmask 261120   ;;  %v138_v3 = vld [vmem:[#allocation4 + $0x8] sm:$0xff]  ;;  %v94_v16 = vlaneseq  ;;  %vm120_vm9 = vcmask 31744  }
   0xc   :  { %v43_v1 = vmul.f32 %v42_v0, %v42_v0  ;;  %86 = vmatpush.bf16.msra.mxu0 %v138_v3  ;;  %v137_v4 = vld [vmem:[#allocation4] sm:$0xff] }
   0xd   :  { %v95_v17 = vand.u32 127, %v94_v16 }
   0xe   :  { %v45_v2 = vsel %vm44_vm0, %v43_v1, 0.0 }
   0xf   :  { %46 = vadd.xlane.f32.xlu0 %v45_v2  ;;  %vm96_vm4 = vcmp.lt.s32.totalorder %v95_v17, 4 }
  0x10   :  { %87 = vmatpush.bf16.msra.mxu0 %v137_v4 }
  0x82   :  { %v47_v5 = vpop.xlane.xlu0 %46 }
  0x83   :  { %v48_v6 = vmax.f32 %v47_v5, 1e-24 }
  0x85   :  { %143 = vrsqrt.f32 %v48_v6  ;;  %vm55_vm2 = vweird.f32 %v48_v6 }
  0x8b   :  { %v144_v7 = vpop.eup %143 }
  0x8c   :  { %v50_v8 = vmul.f32 %v144_v7, %v48_v6  ;;  %vm56_vm1 = vweird.f32 %v144_v7 }
  0x8d   :  { %vm57_vm3 = vmor %vm55_vm2, %vm56_vm1 }
  0x8e   :  { %v51_v9 = vmul.f32 %v144_v7, %v50_v8 }
  0x90   :  { %v52_v10 = vmul.f32 0.5, %v51_v9 }
  0x92   :  { %v53_v11 = vsub.f32 1.5, %v52_v10 }
  0x94   :  { %v54_v12 = vmul.f32 %v144_v7, %v53_v11 }
  0x96   :  { %v58_v13 = vsel %vm57_vm3, %v144_v7, %v54_v12 }
  0x97   :  { %v59_v14 = vmul.f32 %v58_v13, %v42_v0 }
  0x99   :  { %v60_v15 = vpack.c.bf16 %v59_v14, %v59_v14 }
  0x9b   :  { %136 = vmatmul.msk.bf16.vlgmr.msra.gmra.mxu0 %vm44_vm0, %v60_v15 }
 0x118   :  { %v89_v18 = vpop.f32.mrf.mxu0 }
 0x119   :  { %v93_v19 = vmul.f32 1.4285715, %v89_v18 }
 0x11b   :  { %v97_v20 = vsel %vm96_vm4, %v93_v19, -inf }
 0x11c   :  { %98 = vmax.xlane.f32.xlu0 %v97_v20 }
 0x120   :  { %v91_v21 = vpop.f32.mrf.mxu0 }
 0x18f   :  { %v99_v22 = vpop.xlane.xlu0 %98 }
 0x190   :  { %v100_v23 = vsub.f32 %v97_v20, %v99_v22 }
 0x192   :  { %v101_v24 = vmul.f32 1.442695, %v100_v23 }
 0x194   :  { %145 = vpow2.f32 %v101_v24 }
 0x19a   :  { %v146_v25 = vpop.eup %145 }
 0x19b   :  { %103 = vadd.xlane.f32.xlu1 %v146_v25 }
 0x20e   :  { %v104_v26 = vpop.xlane.xlu1 %103 }
 0x20f   :  { %147 = vrcp.f32 %v104_v26  ;;  %v116_v30 = vand.u32 2147483648, %v104_v26  ;;  %v114_v32 = vand.u32 2147483647, %v104_v26  ;;  %vm110_vm6 = vweird.f32 %v104_v26 }
 0x211   :  { %v117_v34 = vor.u32 1.1754944e-38, %v116_v30  ;;  %vm115_vm8 = vcmp.eq.f32.partialorder %v114_v32, 8.507059e+37 }
 0x215   :  { %v148_v27 = vpop.eup %147 }
 0x216   :  { %v106_v28 = vmul.f32 %v148_v27, %v104_v26  ;;  %vm111_vm5 = vweird.f32 %v148_v27 }
 0x217   :  { %vm112_vm7 = vmor %vm110_vm6, %vm111_vm5 }
 0x218   :  { %v107_v29 = vsub.f32 1.0, %v106_v28 }
 0x21a   :  { %v108_v31 = vmul.f32 %v148_v27, %v107_v29 }
 0x21c   :  { %v109_v33 = vadd.f32 %v148_v27, %v108_v31 }
 0x21e   :  { %v113_v35 = vsel %vm112_vm7, %v148_v27, %v109_v33 }
 0x21f   :  { %v118_v36 = vsel %vm115_vm8, %v117_v34, %v113_v35 }
 0x220   :  { %v119_v37 = vmul.f32 %v146_v25, %v118_v36 }
 0x222   :  { %121 = vst.msk [vmem:[%s233_s2] sm:$0xff] %vm120_vm9, %v119_v37 }
 0x223   :  { %126 = vsyncpa [#allocation3], 1 }
 0x224   :  { %127 = vsyncpa [#allocation5], 1 }

</bundles_post_ra>
